<compile_context>
chip_gen: v7x
topology: tpu7x:2x2x1
jax: 0.10.0
libtpu: 0.0.40
codegen_flags: <defaults>
</compile_context>

<pallas_src>
import functools

import jax
import jax.numpy as jnp
from jax.experimental import pallas as pl
from jax.experimental.pallas import tpu as pltpu


def _masked_ce_kernel(logits_ref, labels_ref, sum_ref, cnt_ref,
                      acc_sum, acc_cnt, *, unlabeled, tiled_axis, axis_extent):
    """Accumulates per-batch CE loss sum and labeled-pixel count.

    Block shapes: logits (1, C, TR, TL), labels (1, 1, TR, TL),
    outputs (1, 1, 128) per batch, scratch (1, TL) f32 each.
    """
    p_j = pl.program_id(1)          # pixel-tile index within the batch

    @pl.when(p_j == 0)
    def _():
        acc_sum[...] = jnp.zeros_like(acc_sum)
        acc_cnt[...] = jnp.zeros_like(acc_cnt)

    x = logits_ref[0].astype(jnp.float32)        # (C, TR, TL)
    labels = labels_ref[0][0]                    # (TR, TL) int32
    num_c, tr, tl = x.shape

    # Validity mask for the ragged last tile along whichever axis is tiled.
    if tiled_axis == "row":
        idx = jax.lax.broadcasted_iota(jnp.int32, (tr, tl), 0)
        valid = (p_j * tr + idx) < axis_extent   # axis_extent = HW // 128
    else:
        idx = jax.lax.broadcasted_iota(jnp.int32, (tr, tl), 1)
        valid = (p_j * tl + idx) < axis_extent   # axis_extent = HW

    # Whole-block softmax statistics: elementwise VPU/EUP work across the C
    # class planes (no per-class row slicing, no per-pixel XLU reduce).
    m = jnp.max(x, axis=0)                                   # (TR, TL)
    s = jnp.sum(jnp.exp(x - m[None]), axis=0)                # (TR, TL)
    cls = jax.lax.broadcasted_iota(jnp.int32, x.shape, 0)    # (C, TR, TL)
    picked = jnp.sum(jnp.where(cls == labels[None], x, 0.0), axis=0)
    lse = m + jnp.log(s)                                     # (TR, TL)

    has_label = (labels != unlabeled) & valid                # (TR, TL) bool
    # where (not multiply) so garbage in out-of-bounds rows/lanes (possibly
    # inf/nan) cannot contaminate the accumulators.
    loss = jnp.where(has_label, lse - picked, 0.0)

    # Small running accumulators: one sublane reduce per step into (1, TL).
    # (f32 count is exact up to 2^24 labeled pixels per lane position.)
    acc_sum[...] += jnp.sum(loss, axis=0, keepdims=True)
    acc_cnt[...] += jnp.sum(has_label.astype(jnp.float32), axis=0, keepdims=True)

    @pl.when(p_j == pl.num_programs(1) - 1)
    def _():
        lane = jax.lax.broadcasted_iota(jnp.int32, (1, 1, 128), 2)
        sum_ref[...] = jnp.where(lane == 0, jnp.sum(acc_sum[...]), 0.0)
        cnt_ref[...] = jnp.where(lane == 0, jnp.sum(acc_cnt[...]), 0.0)


def sparse_categorical_crossentropy(y_pred, y_true, unlabeled=3,
                                    max_tile_px=512 * 1024,
                                    vmem_input_budget=16 * 1024 * 1024):
    """y_pred: (N, C, H, W) float; y_true: (N, 1, H, W) int. Returns scalar mean CE."""
    n, c, h, w = y_pred.shape
    hw = h * w

    itemsize = jnp.dtype(y_pred.dtype).itemsize
    # Per-pixel HBM/VMEM bytes including double buffering (labels held as i32).
    bytes_per_px = 2 * (c * itemsize + 4)
    budget_px = max(128, (vmem_input_budget // bytes_per_px) // 128 * 128)
    tile_px_cap = max(128, min(max_tile_px, budget_px))

    if hw % 128 == 0:
        # Main path: 2-D (rows, 128) pixel tiles -> fully dense vreg layout.
        r = hw // 128
        rows_cap = max(8, (tile_px_cap // 128) // 8 * 8)
        tr = r if r <= rows_cap else rows_cap          # full dim or mult of 8
        tl = 128
        num_tiles = pl.cdiv(r, tr)
        logits = y_pred.reshape(n, c, r, 128)
        labels = y_true.reshape(n, 1, r, 128).astype(jnp.int32)
        tiled_axis, axis_extent = "row", r
        in_map = lambda b, j: (b, 0, j, 0)
    else:
        # Fallback: flat lane tiling with ragged-tail masking.
        tr = 1
        tl = hw if hw <= tile_px_cap else max(128, tile_px_cap // 128 * 128)
        num_tiles = pl.cdiv(hw, tl)
        logits = y_pred.reshape(n, c, 1, hw)
        labels = y_true.reshape(n, 1, 1, hw).astype(jnp.int32)
        tiled_axis, axis_extent = "lane", hw
        in_map = lambda b, j: (b, 0, 0, j)

    # VMEM budget: double-buffered inputs + padded scratch + headroom.  Defaults
    # keep this under every generation's scoped default (<= ~20 MiB), incl.
    # v7x's 32 MiB; the explicit limit only adds headroom where it is safe.
    block_in_bytes = c * tr * tl * itemsize + tr * tl * 4
    scratch_bytes = 2 * 8 * max(tl, 128) * 4
    vmem_needed = 2 * block_in_bytes + scratch_bytes + (2 << 20)
    vmem_limit = int(min(max(vmem_needed, 32 << 20), 48 << 20))

    kernel = functools.partial(_masked_ce_kernel, unlabeled=unlabeled,
                               tiled_axis=tiled_axis, axis_extent=axis_extent)

    # TODO(synk): when N == 1, the batch-parallel axis gives no megacore
    # benefit on v7x; a pixel-partitioned parallel axis would recover ~2x there.
    loss_parts, cnt_parts = pl.pallas_call(
        kernel,
        out_shape=(jax.ShapeDtypeStruct((n, 1, 128), jnp.float32),
                   jax.ShapeDtypeStruct((n, 1, 128), jnp.float32)),
        grid_spec=pltpu.PrefetchScalarGridSpec(
            num_scalar_prefetch=0,
            grid=(n, num_tiles),
            in_specs=[
                pl.BlockSpec((1, c, tr, tl), in_map),
                pl.BlockSpec((1, 1, tr, tl), in_map),
            ],
            out_specs=[
                pl.BlockSpec((1, 1, 128), lambda b, j: (b, 0, 0)),
                pl.BlockSpec((1, 1, 128), lambda b, j: (b, 0, 0)),
            ],
            scratch_shapes=[
                pltpu.VMEM((1, tl), jnp.float32),   # running loss sum
                pltpu.VMEM((1, tl), jnp.float32),   # running labeled count
            ],
        ),
        compiler_params=pltpu.CompilerParams(
            dimension_semantics=("parallel", "arbitrary"),
            vmem_limit_bytes=vmem_limit),
    )(logits, labels)

    # reduction='mean' over labeled pixels only (NaN if none are labeled).
    return jnp.sum(loss_parts) / jnp.sum(cnt_parts)


def _reference(y_pred, y_true, unlabeled=3):
    """Pure-JAX reference mirroring the PyTorch module."""
    n, c, h, w = y_pred.shape
    logits = jnp.transpose(y_pred, (0, 2, 3, 1)).reshape(-1, c).astype(jnp.float32)
    labels = y_true.reshape(-1).astype(jnp.int32)
    mask = (labels != unlabeled).astype(jnp.float32)
    lse = jax.scipy.special.logsumexp(logits, axis=-1)
    picked = jnp.take_along_axis(logits, labels[:, None], axis=-1)[:, 0]
    loss = (lse - picked) * mask
    return jnp.sum(loss) / jnp.sum(mask)


if __name__ == "__main__":
    key = jax.random.PRNGKey(0)
    k1, k2, k3, k4, k5, k6 = jax.random.split(key, 6)

    # Test 1: canonical small shape, main (HW % 128 == 0) path, single tile.
    N, C, H, W = 2, 4, 16, 16
    y_pred = jax.random.normal(k1, (N, C, H, W), dtype=jnp.float32)
    # Labels in [0, C); value 3 doubles as the "unlabeled" marker (module default).
    y_true = jax.random.randint(k2, (N, 1, H, W), 0, C, dtype=jnp.int32)
    out = jax.block_until_ready(sparse_categorical_crossentropy(y_pred, y_true))
    ref = _reference(y_pred, y_true)
    assert jnp.allclose(out, ref, rtol=1e-5, atol=1e-5), (out, ref)

    # Test 2: main path with several row tiles and a ragged last row tile.
    H2, W2 = 64, 40                       # hw = 2560 -> 20 rows of 128 pixels
    y_pred2 = jax.random.normal(k3, (N, C, H2, W2), dtype=jnp.float32)
    y_true2 = jax.random.randint(k4, (N, 1, H2, W2), 0, C, dtype=jnp.int32)
    out2 = jax.block_until_ready(
        sparse_categorical_crossentropy(y_pred2, y_true2, max_tile_px=1024))
    ref2 = _reference(y_pred2, y_true2)
    assert jnp.allclose(out2, ref2, rtol=1e-5, atol=1e-5), (out2, ref2)

    # Test 3: fallback path, HW not divisible by 128, ragged last lane tile.
    H3, W3 = 18, 18                       # hw = 324
    y_pred3 = jax.random.normal(k5, (N, C, H3, W3), dtype=jnp.float32)
    y_true3 = jax.random.randint(k6, (N, 1, H3, W3), 0, C, dtype=jnp.int32)
    out3 = jax.block_until_ready(
        sparse_categorical_crossentropy(y_pred3, y_true3, max_tile_px=128))
    ref3 = _reference(y_pred3, y_true3)
    assert jnp.allclose(out3, ref3, rtol=1e-5, atol=1e-5), (out3, ref3)

    print("KERNEL_OK")
</pallas_src>

<mosaic_0001>
module attributes {stable_mosaic.version = 11 : i64} {
  func.func @_masked_ce_kernel(%arg0: i32, %arg1: i32, %arg2: memref<1x4x2x128xf32, #tpu.memory_space<vmem>>, %arg3: memref<1x1x2x128xi32, #tpu.memory_space<vmem>>, %arg4: memref<1x1x128xf32, #tpu.memory_space<vmem>>, %arg5: memref<1x1x128xf32, #tpu.memory_space<vmem>>, %arg6: memref<1x128xf32, #tpu.memory_space<vmem>>, %arg7: memref<1x128xf32, #tpu.memory_space<vmem>>) attributes {dimension_semantics = [#tpu.dimension_semantics<parallel>, #tpu.dimension_semantics<arbitrary>], iteration_bounds = array<i64: 2, 1>, scalar_prefetch = 0 : i64, scratch_operands = 2 : i64, tpu.core_type = #tpu.core_type<tc>, window_params = [{transform_indices = @transform_0, window_bounds = array<i64: 1, 4, 2, 128>}, {transform_indices = @transform_1, window_bounds = array<i64: 1, 1, 2, 128>}, {transform_indices = @transform_2, window_bounds = array<i64: 1, 1, 128>}, {transform_indices = @transform_3, window_bounds = array<i64: 1, 1, 128>}]} {
    %c0_i32 = arith.constant 0 : i32
    %0 = arith.cmpi eq, %arg1, %c0_i32 : i32
    %1 = arith.extui %0 : i1 to i32
    %c0_i32_0 = arith.constant 0 : i32
    %2 = arith.cmpi ne, %1, %c0_i32_0 : i32
    scf.if %2 {
      %cst_25 = arith.constant 0.000000e+00 : f32
      %50 = vector.broadcast %cst_25 : f32 to vector<1x128xf32>
      %c0_26 = arith.constant 0 : index
      %c0_27 = arith.constant 0 : index
      %51 = vector.load %arg6[%c0_26, %c0_27] : memref<1x128xf32, #tpu.memory_space<vmem>>, vector<1x128xf32>
      tpu.vector_store %arg6[%c0_26, %c0_27], %50 {strides = array<i32>} : memref<1x128xf32, #tpu.memory_space<vmem>>, vector<1x128xf32>,
      %cst_28 = arith.constant 0.000000e+00 : f32
      %52 = vector.broadcast %cst_28 : f32 to vector<1x128xf32>
      %c0_29 = arith.constant 0 : index
      %c0_30 = arith.constant 0 : index
      %53 = vector.load %arg7[%c0_29, %c0_30] : memref<1x128xf32, #tpu.memory_space<vmem>>, vector<1x128xf32>
      tpu.vector_store %arg7[%c0_29, %c0_30], %52 {strides = array<i32>} : memref<1x128xf32, #tpu.memory_space<vmem>>, vector<1x128xf32>,
    } else {
    }
    %c0 = arith.constant 0 : index
    %c0_1 = arith.constant 0 : index
    %c0_2 = arith.constant 0 : index
    %c0_3 = arith.constant 0 : index
    %3 = vector.load %arg2[%c0, %c0_1, %c0_2, %c0_3] : memref<1x4x2x128xf32, #tpu.memory_space<vmem>>, vector<1x4x2x128xf32>
    %4 = vector.shape_cast %3 : vector<1x4x2x128xf32> to vector<4x2x128xf32>
    %c0_4 = arith.constant 0 : index
    %c0_5 = arith.constant 0 : index
    %c0_6 = arith.constant 0 : index
    %c0_7 = arith.constant 0 : index
    %5 = vector.load %arg3[%c0_4, %c0_5, %c0_6, %c0_7] : memref<1x1x2x128xi32, #tpu.memory_space<vmem>>, vector<1x1x2x128xi32>
    %6 = vector.shape_cast %5 : vector<1x1x2x128xi32> to vector<1x2x128xi32>
    %7 = vector.shape_cast %6 : vector<1x2x128xi32> to vector<2x128xi32>
    %8 = tpu.iota {dimensions = array<i32: 0>} : vector<2x128xi32>
    %c2_i32 = arith.constant 2 : i32
    %9 = arith.muli %arg1, %c2_i32 : i32
    %10 = vector.broadcast %9 : i32 to vector<2x128xi32>
    %11 = arith.addi %10, %8 : vector<2x128xi32>
    %c2_i32_8 = arith.constant 2 : i32
    %12 = vector.broadcast %c2_i32_8 : i32 to vector<2x128xi32>
    %13 = arith.cmpi slt, %11, %12 : vector<2x128xi32>
    %cst = arith.constant dense<0xFF800000> : vector<2x128xf32>
    %14 = vector.multi_reduction <maximumf>, %4, %cst [0] : vector<4x2x128xf32> to vector<2x128xf32>
    %15 = vector.shape_cast %14 : vector<2x128xf32> to vector<1x2x128xf32>
    %16 = vector.broadcast %15 : vector<1x2x128xf32> to vector<4x2x128xf32>
    %17 = arith.subf %4, %16 : vector<4x2x128xf32>
    %18 = math.exp %17 : vector<4x2x128xf32>
    %cst_9 = arith.constant dense<0.000000e+00> : vector<2x128xf32>
    %19 = vector.multi_reduction <add>, %18, %cst_9 [0] : vector<4x2x128xf32> to vector<2x128xf32>
    %20 = tpu.iota {dimensions = array<i32: 0>} : vector<4x2x128xi32>
    %21 = vector.shape_cast %7 : vector<2x128xi32> to vector<1x2x128xi32>
    %22 = vector.broadcast %21 : vector<1x2x128xi32> to vector<4x2x128xi32>
    %23 = arith.cmpi eq, %20, %22 : vector<4x2x128xi32>
    %cst_10 = arith.constant 0.000000e+00 : f32
    %24 = vector.broadcast %cst_10 : f32 to vector<4x2x128xf32>
    %25 = arith.select %23, %4, %24 : vector<4x2x128xi1>, vector<4x2x128xf32>
    %cst_11 = arith.constant dense<0.000000e+00> : vector<2x128xf32>
    %26 = vector.multi_reduction <add>, %25, %cst_11 [0] : vector<4x2x128xf32> to vector<2x128xf32>
    %27 = math.log %19 : vector<2x128xf32>
    %28 = arith.addf %14, %27 : vector<2x128xf32>
    %c3_i32 = arith.constant 3 : i32
    %29 = vector.broadcast %c3_i32 : i32 to vector<2x128xi32>
    %30 = arith.cmpi ne, %7, %29 : vector<2x128xi32>
    %31 = arith.andi %30, %13 : vector<2x128xi1>
    %32 = arith.subf %28, %26 : vector<2x128xf32>
    %cst_12 = arith.constant 0.000000e+00 : f32
    %33 = vector.broadcast %cst_12 : f32 to vector<2x128xf32>
    %34 = arith.select %31, %32, %33 : vector<2x128xi1>, vector<2x128xf32>
    %c0_13 = arith.constant 0 : index
    %c0_14 = arith.constant 0 : index
    %35 = vector.load %arg6[%c0_13, %c0_14] : memref<1x128xf32, #tpu.memory_space<vmem>>, vector<1x128xf32>
    %cst_15 = arith.constant dense<0.000000e+00> : vector<128xf32>
    %36 = vector.multi_reduction <add>, %34, %cst_15 [0] : vector<2x128xf32> to vector<128xf32>
    %37 = vector.shape_cast %36 : vector<128xf32> to vector<1x128xf32>
    %38 = arith.addf %35, %37 : vector<1x128xf32>
    %c0_16 = arith.constant 0 : index
    %c0_17 = arith.constant 0 : index
    %39 = vector.load %arg6[%c0_16, %c0_17] : memref<1x128xf32, #tpu.memory_space<vmem>>, vector<1x128xf32>
    tpu.vector_store %arg6[%c0_16, %c0_17], %38 {strides = array<i32>} : memref<1x128xf32, #tpu.memory_space<vmem>>, vector<1x128xf32>,
    %c0_18 = arith.constant 0 : index
    %c0_19 = arith.constant 0 : index
    %40 = vector.load %arg7[%c0_18, %c0_19] : memref<1x128xf32, #tpu.memory_space<vmem>>, vector<1x128xf32>
    %41 = arith.extui %31 : vector<2x128xi1> to vector<2x128xi32>
    %42 = arith.sitofp %41 : vector<2x128xi32> to vector<2x128xf32>
    %cst_20 = arith.constant dense<0.000000e+00> : vector<128xf32>
    %43 = vector.multi_reduction <add>, %42, %cst_20 [0] : vector<2x128xf32> to vector<128xf32>
    %44 = vector.shape_cast %43 : vector<128xf32> to vector<1x128xf32>
    %45 = arith.addf %40, %44 : vector<1x128xf32>
    %c0_21 = arith.constant 0 : index
    %c0_22 = arith.constant 0 : index
    %46 = vector.load %arg7[%c0_21, %c0_22] : memref<1x128xf32, #tpu.memory_space<vmem>>, vector<1x128xf32>
    tpu.vector_store %arg7[%c0_21, %c0_22], %45 {strides = array<i32>} : memref<1x128xf32, #tpu.memory_space<vmem>>, vector<1x128xf32>,
    %c0_i32_23 = arith.constant 0 : i32
    %47 = arith.cmpi eq, %arg1, %c0_i32_23 : i32
    %48 = arith.extui %47 : i1 to i32
    %c0_i32_24 = arith.constant 0 : i32
    %49 = arith.cmpi ne, %48, %c0_i32_24 : i32
    scf.if %49 {
      %50 = tpu.iota {dimensions = array<i32: 2>} : vector<1x1x128xi32>
      %c0_i32_25 = arith.constant 0 : i32
      %51 = vector.broadcast %c0_i32_25 : i32 to vector<1x1x128xi32>
      %52 = arith.cmpi eq, %50, %51 : vector<1x1x128xi32>
      %c0_26 = arith.constant 0 : index
      %c0_27 = arith.constant 0 : index
      %53 = vector.load %arg6[%c0_26, %c0_27] : memref<1x128xf32, #tpu.memory_space<vmem>>, vector<1x128xf32>
      %54 = vector.shape_cast %53 : vector<1x128xf32> to vector<1x1x128xf32>
      %cst_28 = arith.constant dense<0.000000e+00> : vector<1xf32>
      %55 = vector.multi_reduction <add>, %54, %cst_28 [1, 2] : vector<1x1x128xf32> to vector<1xf32>
      %56 = vector.shape_cast %55 : vector<1xf32> to vector<1x1x1xf32>
      %57 = vector.extract %56[0, 0, 0] : f32 from vector<1x1x1xf32>
      %cst_29 = arith.constant 0.000000e+00 : f32
      %58 = vector.broadcast %57 : f32 to vector<1x1x128xf32>
      %59 = vector.broadcast %cst_29 : f32 to vector<1x1x128xf32>
      %60 = arith.select %52, %58, %59 : vector<1x1x128xi1>, vector<1x1x128xf32>
      %c0_30 = arith.constant 0 : index
      %c0_31 = arith.constant 0 : index
      %c0_32 = arith.constant 0 : index
      %61 = vector.load %arg4[%c0_30, %c0_31, %c0_32] : memref<1x1x128xf32, #tpu.memory_space<vmem>>, vector<1x1x128xf32>
      tpu.vector_store %arg4[%c0_30, %c0_31, %c0_32], %60 {strides = array<i32>} : memref<1x1x128xf32, #tpu.memory_space<vmem>>, vector<1x1x128xf32>,
      %c0_i32_33 = arith.constant 0 : i32
      %62 = vector.broadcast %c0_i32_33 : i32 to vector<1x1x128xi32>
      %63 = arith.cmpi eq, %50, %62 : vector<1x1x128xi32>
      %c0_34 = arith.constant 0 : index
      %c0_35 = arith.constant 0 : index
      %64 = vector.load %arg7[%c0_34, %c0_35] : memref<1x128xf32, #tpu.memory_space<vmem>>, vector<1x128xf32>
      %65 = vector.shape_cast %64 : vector<1x128xf32> to vector<1x1x128xf32>
      %cst_36 = arith.constant dense<0.000000e+00> : vector<1xf32>
      %66 = vector.multi_reduction <add>, %65, %cst_36 [1, 2] : vector<1x1x128xf32> to vector<1xf32>
      %67 = vector.shape_cast %66 : vector<1xf32> to vector<1x1x1xf32>
      %68 = vector.extract %67[0, 0, 0] : f32 from vector<1x1x1xf32>
      %cst_37 = arith.constant 0.000000e+00 : f32
      %69 = vector.broadcast %68 : f32 to vector<1x1x128xf32>
      %70 = vector.broadcast %cst_37 : f32 to vector<1x1x128xf32>
      %71 = arith.select %63, %69, %70 : vector<1x1x128xi1>, vector<1x1x128xf32>
      %c0_38 = arith.constant 0 : index
      %c0_39 = arith.constant 0 : index
      %c0_40 = arith.constant 0 : index
      %72 = vector.load %arg5[%c0_38, %c0_39, %c0_40] : memref<1x1x128xf32, #tpu.memory_space<vmem>>, vector<1x1x128xf32>
      tpu.vector_store %arg5[%c0_38, %c0_39, %c0_40], %71 {strides = array<i32>} : memref<1x1x128xf32, #tpu.memory_space<vmem>>, vector<1x1x128xf32>,
    } else {
    }
    return
  }
  func.func @transform_0(%arg0: i32, %arg1: i32) -> (i32, i32, i32, i32) {
    %c0_i32 = arith.constant 0 : i32
    %c0_i32_0 = arith.constant 0 : i32
    %c0_i32_1 = arith.constant 0 : i32
    return %arg0, %c0_i32, %arg1, %c0_i32_0 : i32, i32, i32, i32
  }
  func.func @transform_1(%arg0: i32, %arg1: i32) -> (i32, i32, i32, i32) {
    %c0_i32 = arith.constant 0 : i32
    %c0_i32_0 = arith.constant 0 : i32
    %c0_i32_1 = arith.constant 0 : i32
    return %arg0, %c0_i32, %arg1, %c0_i32_0 : i32, i32, i32, i32
  }
  func.func @transform_2(%arg0: i32, %arg1: i32) -> (i32, i32, i32) {
    %c0_i32 = arith.constant 0 : i32
    %c0_i32_0 = arith.constant 0 : i32
    %c0_i32_1 = arith.constant 0 : i32
    return %arg0, %c0_i32, %c0_i32_0 : i32, i32, i32
  }
  func.func @transform_3(%arg0: i32, %arg1: i32) -> (i32, i32, i32) {
    %c0_i32 = arith.constant 0 : i32
    %c0_i32_0 = arith.constant 0 : i32
    %c0_i32_1 = arith.constant 0 : i32
    return %arg0, %c0_i32, %c0_i32_0 : i32, i32, i32
  }
}

</mosaic_0001>

<bundles_post_ra>
// kernel: tpu_custom_call.1
= control target key start
LH: loop header
LB: loop body
LE: loop exit
PB: predicated region body
PF: predicated region fallthrough
CT: control target
= control target key end

     0   :  { %9 = vsyncpa [#allocation5], 0  ;;  %s1127_s0 = inlined_call_operand.hbm [shape: f32[2,4,2,128], index: 0, kind: input, shape index: {}]   ;;  %s1128_s1 = inlined_call_operand.hbm [shape: s32[2,1,2,128], index: 1, kind: input, shape index: {}]   ;;  %s1129_s2 = inlined_call_operand.hbm [shape: f32[2,1,128], index: 2, kind: output, shape index: {0}]   ;;  %s1130_s3 = inlined_call_operand.hbm [shape: f32[2,1,128], index: 3, kind: output, shape index: {1}]  }
   0x1   :  { %11 = vsyncpa [#allocation5 + $0x1], 0 }
   0x2   :  { %12 = vsyncpa [#allocation8], 0 }
   0x3   :  { %14 = vsyncpa [#allocation8 + $0x1], 0 }
   0x4   :  { %15 = vsyncpa [#allocation6], 0 }
   0x5   :  { %17 = vsyncpa [#allocation6 + $0x1], 0 }
   0x6   :  { %18 = vsyncpa [#allocation11], 0 }
   0x7   :  { %20 = vsyncpa [#allocation11 + $0x1], 0  ;;  %s848_s12 = smov 0   ;;  %s850_s13 = smov 0  }
   0x8   :  { %s852_s14 = smov 0   ;;  %s854_s15 = smov 0  }
   0x9   :  { %s856_s16 = smov 0   ;;  %s858_s17 = smov 0  }
   0xa LB: > { %s534_s18 = sadd.s32 4294967295, %s819_s17   ;;  %s535_s19 = sadd.s32 4294967294, %s819_s17   ;;  %s819_s17 = sphi %s858_s17, %s26_s17   ;;  %s815_s16 = sphi %s856_s16, %s1151_s16   ;;  %s811_s15 = sphi %s854_s15, %s1150_s15   ;;  %s807_s14 = sphi %s852_s14, %s1149_s14   ;;  %s803_s13 = sphi %s850_s13, %s1148_s13   ;;  %s799_s12 = sphi %s848_s12, %s1147_s12  }
   0xb   : > { %s38_s20 = sadd.s32 1, %s815_s16  ;;  %s47_s21 = sadd.s32 1, %s807_s14 }
   0xc   : > { %p40_p0 = scmp.ge.s32.totalorder %s38_s20, 2  ;;  %p54_p1 = scmp.ne.s32.totalorder %s807_s14, %s803_s13 }
   0xd   : > { %p55_p2 = scmp.eq.s32.totalorder %s819_s17, 0  ;;  %p60_p3 = scmp.ne.s32.totalorder %s803_s13, %s799_s12 }
   0xe   : > { %s1153_s20 = smov (%p40_p0, %s38_s20), 0  ;;  %p61_p5 = scmp.eq.s32.totalorder %s534_s18, 0 }
   0xf   : > { %p889_p4 = por %p55_p2, %p54_p1  ;;  %s42_s23 = ssub.s32 %s815_s16, %s1153_s20 }
  0x10   : > { %p112_p6 = scmp.eq.s32.totalorder %s534_s18, 1  ;;  %p45_p7 = scmp.eq.s32.totalorder %s42_s23, 0 }
  0x11   : > { %p895_p8 = por %p61_p5, %p60_p3  ;;  %p118_p10 = scmp.eq.s32.totalorder %s535_s19, 1 }
  0x12   : > { %p899_p9 = por %p112_p6, %p54_p1  ;;  %p578_p13 = scmp.lt.s32.totalorder %s819_s17, 2 }
  0x13   : > { %s1134_s24 = scalar_select %p895_p8, 1, 0 }
  0x14   : > { %s1135_s25 = scalar_select %p899_p9, 1, 0 }
  0x15   : > { %s904_s26 = scalar_select %p45_p7, %s807_s14, %s47_s21  }
  0x16   : > { %p906_p11 = por %p118_p10, %p60_p3  ;;  %s913_s28 = sand.u32 1, %s807_s14  }
  0x17   : > { %s538_s29 = sshll.u32 %s913_s28, 3  ;;  %s551_s30 = sshll.u32 %s815_s16, 7 }
  0x18   : > { %s1136_s27 = scalar_select %p906_p11, 1, 0 }
  0x19   : > { %s920_s6 = scalar_lea.hbm %s1127_s0, %s551_s30  ;;  %s168_s7 = scalar_lea.vmem [#allocation4], %s538_s29 }
  0x1a   : > { %s176_s8 = sshll.u32 %s168_s7, 4  ;;  %p926_p0 = pnand %p578_p13, %p889_p4  ;;  %s922_s8 = int_to_ptr.vmem [resolvable:$true] %s176_s8 }
  0x1b   : > { %s165_s10 = scalar_lea.sflag [#allocation5], %s913_s28  ;;  %s641_s11 = scalar_lea.hbm %s920_s6, 128 }
  0x1c   : > { %p642_p2 = scmp.ne.s32.totalorder %s920_s6, %s641_s11  ;;  %p643_p3 = pneg %p926_p0 }
  0x1d   : > { %s646_s21 = scalar_lea.hbm %s1127_s0, 256  ;;  %p647_p4 = scmp.lt.u32.totalorder %s920_s6, %s1127_s0 }
  0x1e   : > { %p644_p5 = pnand %p643_p3, %p642_p2  ;;  %p648_p7 = scmp.lt.u32.totalorder %s646_s21, %s641_s11 }
  0x1f   : > { %p650_p13 = scmp.lt.u32.totalorder %s641_s11, %s920_s6 }
  0x20   : > { %p645_p6 = pneg %p644_p5  ;;  %p649_p10 = por %p648_p7, %p647_p4 }
  0x22   : > { %p651_p12 = por %p650_p13, %p649_p10 }
  0x24   : > { %p652_p1 = pnand %p651_p12, %p645_p6 }
  0x26   : > { %655 = shalt.err (!%p652_p1)
}
  0x27   : > { %s656_s29 = scalar_lea.vmem %s922_s8, 128  ;;  %s821_s30 = smov [#allocation4]  }
  0x28   : > { %p657_p2 = scmp.ne.s32.totalorder %s922_s8, %s656_s29  ;;  %s661_s4 = sshll.u32 %s821_s30, 4  ;;  %s662_s4 = int_to_ptr.vmem [resolvable:$false] %s661_s4 }
  0x29   : > { %s663_s5 = scalar_lea.vmem %s662_s4, 256  ;;  %p664_p9 = scmp.lt.s32.totalorder %s922_s8, %s662_s4 }
  0x2a   : > { %p659_p5 = pnand %p657_p2, %p643_p3  ;;  %p665_p4 = scmp.lt.s32.totalorder %s663_s5, %s656_s29 }
  0x2c   : > { %p660_p11 = pneg %p659_p5  ;;  %p666_p7 = por %p665_p4, %p664_p9 }
  0x2e   : > { %p667_p10 = pnand %p666_p7, %p660_p11 }
  0x30   : > { %670 = shalt.err (!%p667_p10)
}
  0x31   : > { %s822_s7 = smov 32   ;;  %s823_s11 = smov 2  }
  0x32   : > { %567 = dma.hbm_to_vmem [thread:$0]  (!%p926_p0), %s920_s6, 128, %s922_s8, %s165_s10, %s822_s7, %s822_s7, %s823_s11  }
  0x33   : > { %p203_p12 = scmp.lt.s32.totalorder %s819_s17, 3  ;;  %s541_s18 = sshll.u32 %s913_s28, 1 }
  0x34   : > { %s542_s19 = sshll.u32 %s815_s16, 5  ;;  %p1138_p9 = scmp.ge.s32.totalorder %s819_s17, 1 }
  0x35   : > { %s971_s29 = scalar_lea.hbm %s1128_s1, %s542_s19  ;;  %s190_s30 = scalar_lea.vmem [#allocation7], %s541_s18 }
  0x36   : > { %p964_p11 = pnand %p1138_p9, %p203_p12  ;;  %s198_s4 = sshll.u32 %s190_s30, 4  ;;  %s199_s4 = int_to_ptr.vmem [resolvable:$true] %s198_s4 }
  0x37   : > { %s187_s6 = scalar_lea.sflag [#allocation8], %s913_s28  ;;  %s671_s8 = scalar_lea.hbm %s971_s29, 32 }
  0x38   : > { %s1139_s21 = scalar_select %p964_p11, 1, 0 }
  0x39   : > { %p672_p1 = scmp.ne.s32.totalorder %s971_s29, %s671_s8  ;;  %s676_s7 = scalar_lea.hbm %s1128_s1, 64 }
  0x3a   : > { %p677_p2 = scmp.lt.u32.totalorder %s971_s29, %s1128_s1  ;;  %p678_p5 = scmp.lt.u32.totalorder %s676_s7, %s671_s8 }
  0x3b   : > { %p674_p6 = pnand %p672_p1, %p643_p3  ;;  %p680_p7 = scmp.lt.u32.totalorder %s671_s8, %s971_s29 }
  0x3c   : > { %p679_p4 = por %p678_p5, %p677_p2 }
  0x3d   : > { %p675_p13 = pneg %p674_p6 }
  0x3e   : > { %p681_p10 = por %p680_p7, %p679_p4 }
  0x40   : > { %p682_p12 = pnand %p681_p10, %p675_p13 }
  0x42   : > { %685 = shalt.err (!%p682_p12)
}
  0x43   : > { %s686_s28 = scalar_lea.vmem %s199_s4, 32  ;;  %s824_s18 = smov [#allocation7]  }
  0x44   : > { %p687_p9 = scmp.ne.s32.totalorder %s199_s4, %s686_s28  ;;  %s691_s22 = sshll.u32 %s824_s18, 4  ;;  %s692_s22 = int_to_ptr.vmem [resolvable:$false] %s691_s22 }
  0x45   : > { %s693_s23 = scalar_lea.vmem %s692_s22, 64  ;;  %p694_p8 = scmp.lt.s32.totalorder %s199_s4, %s692_s22 }
  0x46   : > { %p689_p1 = pnand %p687_p9, %p643_p3  ;;  %p695_p11 = scmp.lt.s32.totalorder %s693_s23, %s686_s28 }
  0x48   : > { %p690_p6 = pneg %p689_p1  ;;  %p696_p2 = por %p695_p11, %p694_p8 }
  0x4a   : > { %p697_p5 = pnand %p696_p2, %p690_p6 }
  0x4c   : > { %700 = shalt.err (!%p697_p5)
}
  0x4d   : > { %570 = dma.hbm_to_vmem [thread:$0]  (!%p926_p0), %s971_s29, 32, %s199_s4, %s187_s6  }
  0x4e   : > { %p1140_p13 = scmp.ne.s32.totalorder %s1139_s21, 0 }
  0x4f   : > { %s996_s30 = sand.u32 (!%p1140_p13), 1, %s803_s13   ;;  %p1141_p3 = scmp.ne.s32.totalorder (!%p1140_p13), %s1134_s24, 0 }
  0x50   : > { %207 = sbr.rel (%p1140_p13) target bundleno = 413 (0x19d), region = 28  ;;  %s544_s8 = sshll.u32 (!%p1140_p13), %s996_s30, 3 }
  0x51   : > { %s210_s10 = scalar_lea.sflag (!%p1140_p13), [#allocation5], %s996_s30  ;;  %s213_s5 = scalar_lea.vmem (!%p1140_p13), [#allocation4], %s544_s8 }
  0x57   : > { %782 = dma.done.wait (%p1141_p3), %s210_s10, 128  }
  0x58   : > { %784 = vsyncadd (%p1141_p3), %s210_s10, 4294967168  ;;  %s545_s9 = sshll.u32 %s996_s30, 1  ;;  %s219_s21 = scalar_lea.sflag [#allocation8], %s996_s30 }
  0x59   : > { %s222_s29 = scalar_lea.vmem [#allocation7], %s545_s9 }
  0x5a   : > { %786 = dma.done.wait (%p1141_p3), %s219_s21, 32  }
  0x5b   : > { %788 = vsyncadd (%p1141_p3), %s219_s21, 4294967264  ;;  %v825_v0 = vmov 0.0   ;;  %v264_v1 = vlaneseq  ;;  %vm270_vm0 = vcmask 1041408   ;;  %v259_v3 = vld [vmem:[%s213_s5] sm:$0x3]  ;;  %vm348_vm8 = vcmask 1040384  }
  0x5c   : > { %257 = vst [vmem:[#allocation2] sm:$0x1] %v825_v0  ;;  %258 = vst [vmem:[#allocation3] sm:$0x1] %v825_v0  ;;  %v260_v4 = vld [vmem:[%s213_s5 + $0x2] sm:$0x3] }
  0x5d   : > { %v265_v2 = vshrl.u32 %v264_v1, 7  ;;  %v261_v5 = vld [vmem:[%s213_s5 + $0x4] sm:$0x3]  ;;  %v262_v6 = vld [vmem:[%s213_s5 + $0x6] sm:$0x3]  ;;  %v271_v7 = vsel %vm270_vm0, %v259_v3, -inf }
  0x5e   : > { %v272_v8 = vsel %vm270_vm0, %v260_v4, -inf  ;;  %v273_v9 = vsel %vm270_vm0, %v261_v5, -inf  ;;  %v274_v10 = vsel %vm270_vm0, %v262_v6, -inf  ;;  %v263_v13 = vld [vmem:[%s222_s29] sm:$0x3]  ;;  %s547_s24 = sshll.u32 %s811_s15, 4 }
  0x5f   : > { %v275_v11 = vmax.f32 %v271_v7, %v272_v8  ;;  %v276_v12 = vmax.f32 %v273_v9, %v274_v10  ;;  %vm269_vm1 = vcmp.lt.s32.totalorder %v265_v2, 2  ;;  %vm315_vm2 = vcmp.ne.s32.totalorder %v263_v13, 3  ;;  %s246_s4 = scalar_lea.vmem [#allocation9], %s996_s30  ;;  %s252_s11 = scalar_lea.vmem [#allocation10], %s996_s30 }
  0x60   : > { %vm1015_vm3 = vmand %vm315_vm2, %vm269_vm1  ;;  %vm297_vm4 = vcmp.eq.s32.totalorder %v263_v13, 0  ;;  %vm298_vm5 = vcmp.eq.s32.totalorder %v263_v13, 1  ;;  %vm299_vm6 = vcmp.eq.s32.totalorder %v263_v13, 2  ;;  %vm300_vm7 = vcmp.eq.s32.totalorder %v263_v13, 3  ;;  %s393_s6 = sshll.u32 %s246_s4, 4  ;;  %s406_s19 = sshll.u32 %s252_s11, 4  ;;  %s1045_s6 = int_to_ptr.vmem [resolvable:$true] %s393_s6  ;;  %s1054_s19 = int_to_ptr.vmem [resolvable:$true] %s406_s19 }
  0x61   : > { %v277_v14 = vmax.f32 %v275_v11, %v276_v12  ;;  %v546_v20 = vsel %vm1015_vm3, 1.0, %v825_v0  ;;  %v301_v44 = vsel %vm297_vm4, %v259_v3, 0.0  ;;  %v302_v45 = vsel %vm298_vm5, %v260_v4, 0.0  ;;  %s1043_s22 = scalar_lea.hbm %s1129_s2, %s547_s24  ;;  %s1050_s8 = scalar_lea.hbm %s1130_s3, %s547_s24 }
  0x62   : > { %v332_v25 = vsel %vm270_vm0, %v546_v20, 0.0  ;;  %v305_v47 = vsel %vm270_vm0, %v301_v44, 0.0  ;;  %v306_v48 = vsel %vm270_vm0, %v302_v45, 0.0  ;;  %v303_v49 = vsel %vm299_vm6, %v261_v5, 0.0  ;;  %s377_s5 = scalar_lea.sflag [#allocation6], %s996_s30  ;;  %s701_s9 = scalar_lea.vmem %s1045_s6, 16 }
  0x63   : > { %v278_v15 = vsub.f32 %v259_v3, %v277_v14  ;;  %v279_v16 = vsub.f32 %v260_v4, %v277_v14  ;;  %v280_v17 = vsub.f32 %v261_v5, %v277_v14  ;;  %v281_v18 = vsub.f32 %v262_v6, %v277_v14  ;;  %v329_v31 = vld [vmem:[#allocation3] sm:$0x1]  ;;  %v319_v4 = vld [vmem:[#allocation2] sm:$0x1]  ;;  %p702_p8 = scmp.ne.s32.totalorder %s1045_s6, %s701_s9  ;;  %p1144_p0 = scmp.ne.s32.totalorder %s1135_s25, 0 }
  0x64   : > { %v333_v26 = vrot.slane %v332_v25, 4  ;;  %v307_v50 = vadd.f32 %v306_v48, %v305_v47  ;;  %v308_v51 = vsel %vm270_vm0, %v303_v49, 0.0  ;;  %v304_v52 = vsel %vm300_vm7, %v262_v6, 0.0  ;;  %s826_s21 = smov [#allocation9]  }
  0x65   : > { %v282_v21 = vmul.f32 1.442695, %v278_v15  ;;  %v284_v22 = vmul.f32 1.442695, %v279_v16  ;;  %v286_v23 = vmul.f32 1.442695, %v280_v17  ;;  %p703_p11 = pnand %p702_p8, %p1144_p0 }
  0x66   : > { %v288_v24 = vmul.f32 1.442695, %v281_v18  ;;  %v334_v27 = vadd.f32 %v333_v26, %v332_v25  ;;  %v309_v53 = vadd.f32 %v308_v51, %v307_v50  ;;  %v310_v54 = vsel %vm270_vm0, %v304_v52, 0.0  ;;  %s705_s29 = sshll.u32 %s826_s21, 4  ;;  %s706_s29 = int_to_ptr.vmem [resolvable:$false] %s705_s29 }
  0x67   : > { %631 = vpow2.f32 %v282_v21  ;;  %v345_v25 = vand.u32 127, %v264_v1  ;;  %p704_p4 = pneg %p703_p11  ;;  %p708_p7 = scmp.lt.s32.totalorder %s1045_s6, %s706_s29 }
  0x68   : > { %633 = vpow2.f32 %v284_v22  ;;  %v335_v28 = vrot.slane %v334_v27, 2  ;;  %v311_v56 = vadd.f32 %v310_v54, %v309_v53 }
  0x69   : > { %635 = vpow2.f32 %v286_v23  ;;  %vm346_vm9 = vcmp.eq.s32.totalorder %v345_v25, 0 }
  0x6a   : > { %637 = vpow2.f32 %v288_v24  ;;  %v336_v29 = vadd.f32 %v335_v28, %v334_v27 }
  0x6c   : > { %v337_v30 = vrot.slane %v336_v29, 1 }
  0x6e   : > { %v338_v33 = vadd.f32 %v337_v30, %v336_v29 }
  0x70   : > { %v339_v38 = vadd.f32 %v338_v33, %v329_v31 }
  0x71   : > { %v632_v32 = vpop.eup %631 }
  0x72   : > { %v634_v34 = vpop.eup %633  ;;  %v290_v35 = vsel %vm270_vm0, %v632_v32, 0.0  ;;  %340 = vst [vmem:[#allocation3] sm:$0x1] %v339_v38 }
  0x73   : > { %v636_v36 = vpop.eup %635  ;;  %v291_v37 = vsel %vm270_vm0, %v634_v34, 0.0 }
  0x74   : > { %v638_v39 = vpop.eup %637  ;;  %v292_v40 = vadd.f32 %v291_v37, %v290_v35  ;;  %v293_v41 = vsel %vm270_vm0, %v636_v36, 0.0 }
  0x75   : > { %v295_v42 = vsel %vm270_vm0, %v638_v39, 0.0 }
  0x76   : > { %v294_v43 = vadd.f32 %v293_v41, %v292_v40 }
  0x78   : > { %v296_v46 = vadd.f32 %v295_v42, %v294_v43 }
  0x79   : > { %v362_v8 = vld [vmem:[#allocation3] sm:$0x1] }
  0x7a   : > { %639 = vlog2.f32 %v296_v46  ;;  %v363_v10 = vsel %vm348_vm8, %v362_v8, 0.0 }
  0x84   : > { %v640_v55 = vpop.eup %639 }
  0x85   : > { %v313_v57 = vmul.f32 0.6931472, %v640_v55 }
  0x87   : > { %v314_v58 = vadd.f32 %v313_v57, %v277_v14 }
  0x89   : > { %v317_v59 = vsub.f32 %v314_v58, %v311_v56 }
  0x8b   : > { %v318_v60 = vsel %vm1015_vm3, %v317_v59, 0.0 }
  0x8c   : > { %v320_v61 = vsel %vm270_vm0, %v318_v60, 0.0 }
  0x8d   : > { %v321_v62 = vrot.slane %v320_v61, 4 }
  0x8f   : > { %v322_v63 = vadd.f32 %v321_v62, %v320_v61 }
  0x91   : > { %v323_v0 = vrot.slane %v322_v63, 2 }
  0x93   : > { %v324_v2 = vadd.f32 %v323_v0, %v322_v63 }
  0x95   : > { %v325_v3 = vrot.slane %v324_v2, 1 }
  0x97   : > { %v326_v5 = vadd.f32 %v325_v3, %v324_v2 }
  0x99   : > { %v327_v6 = vadd.f32 %v326_v5, %v319_v4 }
  0x9b   : > { %328 = vst [vmem:[#allocation2] sm:$0x1] %v327_v6 }
  0xa2   : > { %v347_v7 = vld [vmem:[#allocation2] sm:$0x1] }
  0xa3   : > { %v349_v9 = vsel %vm348_vm8, %v347_v7, 0.0 }
  0xa4   : > { %350 = vadd.xlane.f32.xlu0 %v349_v9 }
  0xa8   : > { %364 = vadd.xlane.f32.xlu0 %v363_v10 }
 0x131   : > { %v351_v11 = vpop.xlane.xlu0 %350 }
 0x132   : > { %v352_v12 = vrot.slane %v351_v11, 4 }
 0x134   : > { %v353_v13 = vadd.f32 %v352_v12, %v351_v11 }
 0x135   : > { %v365_v14 = vpop.xlane.xlu0 %364 }
 0x136   : > { %v354_v15 = vrot.slane %v353_v13, 2  ;;  %v366_v16 = vrot.slane %v365_v14, 4 }
 0x138   : > { %v367_v17 = vadd.f32 %v366_v16, %v365_v14  ;;  %v355_v18 = vadd.f32 %v354_v15, %v353_v13 }
 0x13a   : > { %v368_v19 = vrot.slane %v367_v17, 2  ;;  %v356_v20 = vrot.slane %v355_v18, 1 }
 0x13c   : > { %v369_v21 = vadd.f32 %v368_v19, %v367_v17  ;;  %v357_v22 = vadd.f32 %v356_v20, %v355_v18 }
 0x13e   : > { %552 = vpush %v357_v22  ;;  %v370_v23 = vrot.slane %v369_v21, 1 }
 0x140   : > { %v371_v24 = vadd.f32 %v370_v23, %v369_v21 }
 0x142   : > { %554 = vpush %v371_v24 }
 0x16f   : > { %s553_s7 = spop %552 }
 0x170   : > { %v359_v26 = vstv %s553_s7 }
 0x171   : > { %v360_v27 = vsel %vm346_vm9, %v359_v26, 0.0 }
 0x172   : > { %361 = vst [vmem:[%s246_s4] sm:$0x1] %v360_v27  ;;  %s707_s4 = scalar_lea.vmem %s706_s29, 32 }
 0x173   : > { %s1052_s10 = spop %554  ;;  %p709_p10 = scmp.lt.s32.totalorder %s707_s4, %s701_s9 }
 0x174   : > { %v373_v1 = vstv %s1052_s10 }
 0x175   : > { %p710_p12 = por %p709_p10, %p708_p7 }
 0x177   : > { %p711_p9 = pnand %p710_p12, %p704_p4 }
 0x179   : > { %714 = shalt.err (!%p711_p9)
}
 0x17a   : > { %s715_s24 = scalar_lea.hbm %s1043_s22, 16  ;;  %s719_s18 = scalar_lea.hbm %s1129_s2, 32 }
 0x17b   : > { %p716_p1 = scmp.ne.s32.totalorder %s1043_s22, %s715_s24  ;;  %p720_p5 = scmp.lt.u32.totalorder %s1043_s22, %s1129_s2 }
 0x17c   : > { %p721_p13 = scmp.lt.u32.totalorder %s719_s18, %s715_s24  ;;  %p723_p8 = scmp.lt.u32.totalorder %s715_s24, %s1043_s22 }
 0x17d   : > { %p717_p6 = pnand %p716_p1, %p1144_p0 }
 0x17e   : > { %p722_p3 = por %p721_p13, %p720_p5 }
 0x17f   : > { %p718_p2 = pneg %p717_p6 }
 0x180   : > { %p724_p11 = por %p723_p8, %p722_p3 }
 0x182   : > { %p725_p4 = pnand %p724_p11, %p718_p2 }
 0x184   : > { %728 = shalt.err (!%p725_p4)
}
 0x185   : > { %560 = dma.vmem_to_hbm [thread:$0]  (%p1144_p0), %s1045_s6, 16, %s1043_s22, %s377_s5   ;;  %v374_v28 = vsel %vm346_vm9, %v373_v1, 0.0 }
 0x186   : > { %375 = vst [vmem:[%s252_s11] sm:$0x1] %v374_v28  ;;  %s381_s10 = scalar_lea.sflag [#allocation11], %s996_s30  ;;  %s729_s9 = scalar_lea.vmem %s1054_s19, 16 }
 0x187   : > { %p730_p7 = scmp.ne.s32.totalorder %s1054_s19, %s729_s9  ;;  %s827_s21 = smov [#allocation10]  }
 0x188   : > { %s733_s29 = sshll.u32 %s827_s21, 4  ;;  %s734_s29 = int_to_ptr.vmem [resolvable:$false] %s733_s29 }
 0x189   : > { %p731_p10 = pnand %p730_p7, %p1144_p0  ;;  %s735_s4 = scalar_lea.vmem %s734_s29, 32 }
 0x18a   : > { %p736_p9 = scmp.lt.s32.totalorder %s1054_s19, %s734_s29  ;;  %p737_p1 = scmp.lt.s32.totalorder %s735_s4, %s729_s9 }
 0x18b   : > { %p732_p12 = pneg %p731_p10 }
 0x18c   : > { %p738_p6 = por %p737_p1, %p736_p9 }
 0x18e   : > { %p739_p2 = pnand %p738_p6, %p732_p12 }
 0x190   : > { %742 = shalt.err (!%p739_p2)
}
 0x191   : > { %s743_s30 = scalar_lea.hbm %s1050_s8, 16  ;;  %s747_s22 = scalar_lea.hbm %s1130_s3, 32 }
 0x192   : > { %p744_p5 = scmp.ne.s32.totalorder %s1050_s8, %s743_s30  ;;  %p748_p8 = scmp.lt.u32.totalorder %s1050_s8, %s1130_s3 }
 0x193   : > { %p749_p11 = scmp.lt.u32.totalorder %s747_s22, %s743_s30  ;;  %p751_p7 = scmp.lt.u32.totalorder %s743_s30, %s1050_s8 }
 0x194   : > { %p745_p13 = pnand %p744_p5, %p1144_p0 }
 0x195   : > { %p750_p4 = por %p749_p11, %p748_p8 }
 0x196   : > { %p746_p3 = pneg %p745_p13 }
 0x197   : > { %p752_p10 = por %p751_p7, %p750_p4 }
 0x199   : > { %p753_p12 = pnand %p752_p10, %p746_p3 }
 0x19b   : > { %756 = shalt.err (!%p753_p12)
}
 0x19c   : > { %561 = dma.vmem_to_hbm [thread:$0]  (%p1144_p0), %s1054_s19, 16, %s1050_s8, %s381_s10  }
 0x19d PF: > { %s418_s7 = sand.u32 1, %s799_s12   ;;  %p1145_p9 = scmp.ne.s32.totalorder %s1136_s27, 0 }
 0x19e   : > { %p1146_p1 = scmp.ge.s32.totalorder %s819_s17, 2  ;;  %s419_s28 = scalar_lea.sflag [#allocation6], %s418_s7 }
 0x1a0   : > { %p572_p6 = pnand %p1146_p1, %p1145_p9 }
 0x1a2   : > { %790 = dma.done.wait (!%p572_p6), %s419_s28, 16  }
 0x1a3   : > { %792 = vsyncadd (!%p572_p6), %s419_s28, 4294967280  ;;  %s427_s18 = scalar_lea.sflag [#allocation11], %s418_s7 }
 0x1a4   : > { %794 = dma.done.wait (!%p572_p6), %s427_s18, 16  }
 0x1a5   : > { %796 = vsyncadd (!%p572_p6), %s427_s18, 4294967280  ;;  %s26_s17 = sadd.s32 1, %s819_s17   ;;  %s1147_s12 = smov %s803_s13 }
 0x1a6   : > { %p23_p2 = scmp.ge.s32.totalorder %s26_s17, 4   ;;  %s1148_s13 = smov %s807_s14 }
 0x1a7   : > { %s1149_s14 = smov %s904_s26  ;;  %s1150_s15 = smov %s815_s16 }
 0x1a8   : > { %s1151_s16 = smov %s1153_s20  ;;  %25 = sbr.rel (!%p23_p2) target bundleno = 10 (0xa), region = 111 }
 0x1af   :  { %431 = vsyncpa [#allocation5], 1 }
 0x1b0   :  { %433 = vsyncpa [#allocation5 + $0x1], 1 }
 0x1b1   :  { %434 = vsyncpa [#allocation8], 1 }
 0x1b2   :  { %436 = vsyncpa [#allocation8 + $0x1], 1 }
 0x1b3   :  { %437 = vsyncpa [#allocation6], 1 }
 0x1b4   :  { %439 = vsyncpa [#allocation6 + $0x1], 1 }
 0x1b5   :  { %440 = vsyncpa [#allocation11], 1 }
 0x1b6   :  { %442 = vsyncpa [#allocation11 + $0x1], 1 }

</bundles_post_ra>
